<compile_context>
chip_gen: v6e
topology: v6e:2x2x1
jax: 0.10.0
libtpu: 0.0.40
codegen_flags: <defaults>
</compile_context>

<pallas_src>
import functools

import jax
import jax.numpy as jnp
from jax import lax
from jax.experimental import pallas as pl
from jax.experimental.pallas import tpu as pltpu

_LANES = 128
_NUM_SHARDS = 2                          # leading "parallel" grid axis (2 TCs on v7x)
_TARGET_BLOCK_BYTES = 4 * 1024 * 1024    # per input, per pipeline buffer
_VMEM_LIMIT_BYTES = 32 * 1024 * 1024     # applied only when the footprint needs it


def _round_up(x: int, m: int) -> int:
    return ((x + m - 1) // m) * m


def _sublane_multiple(dtype) -> int:
    # Sublane tiling requirement: 8 for 32-bit, 16 for 16-bit, 32 for 8-bit.
    return max(8, 32 // jnp.dtype(dtype).itemsize)


def _rmse_partial_kernel(pred_ref, target_ref, out_ref, *,
                         tile_rows, steps_per_shard, n_valid_elems, needs_mask):
    c = pl.program_id(0)   # shard axis ("parallel")
    k = pl.program_id(1)   # reduction step within the shard ("arbitrary")

    @pl.when(k == 0)
    def _():
        out_ref[...] = jnp.zeros_like(out_ref)

    d = pred_ref[...].astype(jnp.float32) - target_ref[...].astype(jnp.float32)
    sq = d * d

    def fold(x):
        # Lane-shaped partial accumulation: pure VPU adds folding the tile rows
        # into the resident (1, 8, 128) output block; the single cross-lane
        # reduce happens once, in the wrapper.
        return jnp.sum(x.reshape(tile_rows // 8, 8, _LANES), axis=0).reshape(
            1, 8, _LANES)

    if not needs_mask:
        out_ref[...] += fold(sq)
    else:
        block_elems = tile_rows * _LANES
        # Unclamped global block index.  (The input index_map may clamp fully
        # out-of-range shard-padding blocks back onto the last valid block; the
        # mask below then zeroes their entire contribution.)
        block_start = (c * steps_per_shard + k) * block_elems
        block_fully_valid = block_start + block_elems <= n_valid_elems

        @pl.when(block_fully_valid)
        def _():
            # Fast path: full blocks pay no masking cost.
            out_ref[...] += fold(sq)

        @pl.when(jnp.logical_not(block_fully_valid))
        def _():
            # Element mask for the ragged tail (int32 flat index is enough for
            # anything that fits twice in HBM).
            row_ids = lax.broadcasted_iota(jnp.int32, sq.shape, 0)
            lane_ids = lax.broadcasted_iota(jnp.int32, sq.shape, 1)
            flat = block_start + row_ids * _LANES + lane_ids
            out_ref[...] += fold(jnp.where(flat < n_valid_elems, sq, 0.0))


def rmse_loss(pred: jax.Array, target: jax.Array, eps: float = 1e-6) -> jax.Array:
    assert pred.shape == target.shape, "pred/target shapes must match"
    n_elems = pred.size

    # Flatten only (no dtype cast, no pad copy in the common case).
    pred_f = pred.reshape(-1)
    target_f = target.reshape(-1)

    sub_mult = max(_sublane_multiple(pred_f.dtype),
                   _sublane_multiple(target_f.dtype))

    if n_elems % _LANES != 0:
        # Rare fallback: a (rows, 128) view needs a lane-multiple length, so pad
        # to a whole (sub_mult, 128) tile.  Padded positions are zero in BOTH
        # tensors so their squared diff contributes 0 to the sum.
        # TODO(synk): a 1-D-block layout would remove this last pad copy.
        n_valid = _round_up(n_elems, _LANES * sub_mult)
        pred_f = jnp.pad(pred_f, (0, n_valid - n_elems))
        target_f = jnp.pad(target_f, (0, n_valid - n_elems))
    else:
        n_valid = n_elems

    rows = n_valid // _LANES
    pred2d = pred_f.reshape(rows, _LANES)
    target2d = target_f.reshape(rows, _LANES)

    # --- dtype- and generation-aware tile sizing (constant bytes per step) ---
    max_item = max(pred2d.dtype.itemsize, target2d.dtype.itemsize)
    try:
        vmem_cap = pltpu.get_tpu_info().vmem_capacity_bytes
    except Exception:
        vmem_cap = 64 * 1024 * 1024   # v7x per-TC physical: most conservative.
    target_block_bytes = min(_TARGET_BLOCK_BYTES, vmem_cap // 16)
    tile_rows = max(sub_mult,
                    (target_block_bytes // (_LANES * max_item)) // sub_mult * sub_mult)
    rows_per_shard = pl.cdiv(rows, _NUM_SHARDS)
    tile_rows = min(tile_rows, _round_up(rows_per_shard, sub_mult))

    total_blocks = pl.cdiv(rows, tile_rows)
    steps_per_shard = pl.cdiv(total_blocks, _NUM_SHARDS)
    padded_blocks = _NUM_SHARDS * steps_per_shard
    last_block = total_blocks - 1
    has_oob_blocks = padded_blocks > total_blocks
    needs_mask = (padded_blocks * tile_rows * _LANES) != n_valid

    if has_oob_blocks:
        # Clamp fully-out-of-range shard-padding blocks onto the last valid
        # block (the kernel masks their whole contribution to zero).
        def in_index_map(c, k):
            return (jnp.minimum(c * steps_per_shard + k, last_block), 0)
    else:
        def in_index_map(c, k):
            return (c * steps_per_shard + k, 0)

    kernel = functools.partial(
        _rmse_partial_kernel,
        tile_rows=tile_rows,
        steps_per_shard=steps_per_shard,
        n_valid_elems=n_valid,
        needs_mask=needs_mask,
    )

    in_bytes = (pred2d.size * pred2d.dtype.itemsize
                + target2d.size * target2d.dtype.itemsize)
    dbuf_bytes = 2 * tile_rows * _LANES * (pred2d.dtype.itemsize
                                           + target2d.dtype.itemsize)
    vmem_limit = _VMEM_LIMIT_BYTES if dbuf_bytes > 12 * 1024 * 1024 else None

    partials = pl.pallas_call(
        kernel,
        out_shape=jax.ShapeDtypeStruct((_NUM_SHARDS, 8, _LANES), jnp.float32),
        grid_spec=pltpu.PrefetchScalarGridSpec(
            num_scalar_prefetch=0,
            grid=(_NUM_SHARDS, steps_per_shard),
            in_specs=[
                pl.BlockSpec((tile_rows, _LANES), in_index_map),
                pl.BlockSpec((tile_rows, _LANES), in_index_map),
            ],
            out_specs=pl.BlockSpec((1, 8, _LANES), lambda c, k: (c, 0, 0)),
        ),
        compiler_params=pltpu.CompilerParams(
            dimension_semantics=("parallel", "arbitrary"),
            vmem_limit_bytes=vmem_limit,
        ),
        cost_estimate=pl.CostEstimate(
            flops=3 * n_valid,
            transcendentals=0,
            bytes_accessed=in_bytes + _NUM_SHARDS * 8 * _LANES * 4,
        ),
    )(pred2d, target2d)

    # Final cross-lane reduce + mean / clamp / sqrt on a tiny (2, 8, 128) array.
    # Semantics match the PyTorch module: sqrt(clamp(mse, min=eps)).
    # TODO(synk): for > ~2^28 elements a compensated / two-level sum would
    # tighten f32 accumulation error.
    mse = jnp.sum(partials) / jnp.float32(n_elems)
    return jnp.sqrt(jnp.maximum(mse, jnp.float32(eps)))


if __name__ == "__main__":
    key = jax.random.PRNGKey(0)
    k1, k2, k3, k4 = jax.random.split(key, 4)

    # Main case (matches the module's typical 4-D inputs).
    pred = jax.random.normal(k1, (2, 4, 16, 16), dtype=jnp.float32)
    target = jax.random.normal(k2, (2, 4, 16, 16), dtype=jnp.float32)
    loss = rmse_loss(pred, target)
    jax.block_until_ready(loss)
    ref = jnp.sqrt(jnp.maximum(jnp.mean((pred - target) ** 2), 1e-6))
    assert jnp.allclose(loss, ref, rtol=1e-4, atol=1e-6), (loss, ref)

    # Ragged-row tail: exercises the masked final-block path (63 rows, tile 32).
    p2 = jax.random.normal(k3, (63, 128), dtype=jnp.float32)
    t2 = jax.random.normal(k4, (63, 128), dtype=jnp.float32)
    loss2 = rmse_loss(p2, t2)
    jax.block_until_ready(loss2)
    ref2 = jnp.sqrt(jnp.maximum(jnp.mean((p2 - t2) ** 2), 1e-6))
    assert jnp.allclose(loss2, ref2, rtol=1e-4, atol=1e-6), (loss2, ref2)

    # bf16 inputs: exercises dtype-aware tiling + in-kernel f32 accumulation.
    p3 = p2.astype(jnp.bfloat16)
    t3 = t2.astype(jnp.bfloat16)
    loss3 = rmse_loss(p3, t3)
    jax.block_until_ready(loss3)
    ref3 = jnp.sqrt(jnp.maximum(
        jnp.mean((p3.astype(jnp.float32) - t3.astype(jnp.float32)) ** 2), 1e-6))
    assert jnp.allclose(loss3, ref3, rtol=1e-3, atol=1e-6), (loss3, ref3)

    print("KERNEL_OK")
</pallas_src>

<mosaic_0001>
module attributes {stable_mosaic.version = 11 : i64} {
  func.func @_rmse_partial_kernel(%arg0: i32, %arg1: i32, %arg2: memref<8x128xf32, #tpu.memory_space<vmem>>, %arg3: memref<8x128xf32, #tpu.memory_space<vmem>>, %arg4: memref<1x8x128xf32, #tpu.memory_space<vmem>>) attributes {dimension_semantics = [#tpu.dimension_semantics<parallel>, #tpu.dimension_semantics<arbitrary>], iteration_bounds = array<i64: 2, 1>, scalar_prefetch = 0 : i64, scratch_operands = 0 : i64, tpu.core_type = #tpu.core_type<tc>, window_params = [{transform_indices = @transform_0, window_bounds = array<i64: 8, 128>}, {transform_indices = @transform_1, window_bounds = array<i64: 8, 128>}, {transform_indices = @transform_2, window_bounds = array<i64: 1, 8, 128>}]} {
    %c0_i32 = arith.constant 0 : i32
    %0 = arith.cmpi eq, %arg1, %c0_i32 : i32
    %1 = arith.extui %0 : i1 to i32
    %c0_i32_0 = arith.constant 0 : i32
    %2 = arith.cmpi ne, %1, %c0_i32_0 : i32
    scf.if %2 {
      %cst_10 = arith.constant 0.000000e+00 : f32
      %13 = vector.broadcast %cst_10 : f32 to vector<1x8x128xf32>
      %c0_11 = arith.constant 0 : index
      %c0_12 = arith.constant 0 : index
      %c0_13 = arith.constant 0 : index
      %14 = vector.load %arg4[%c0_11, %c0_12, %c0_13] : memref<1x8x128xf32, #tpu.memory_space<vmem>>, vector<1x8x128xf32>
      tpu.vector_store %arg4[%c0_11, %c0_12, %c0_13], %13 {strides = array<i32>} : memref<1x8x128xf32, #tpu.memory_space<vmem>>, vector<1x8x128xf32>,
    } else {
    }
    %c0 = arith.constant 0 : index
    %c0_1 = arith.constant 0 : index
    %3 = vector.load %arg2[%c0, %c0_1] : memref<8x128xf32, #tpu.memory_space<vmem>>, vector<8x128xf32>
    %c0_2 = arith.constant 0 : index
    %c0_3 = arith.constant 0 : index
    %4 = vector.load %arg3[%c0_2, %c0_3] : memref<8x128xf32, #tpu.memory_space<vmem>>, vector<8x128xf32>
    %5 = arith.subf %3, %4 : vector<8x128xf32>
    %6 = arith.mulf %5, %5 : vector<8x128xf32>
    %c0_4 = arith.constant 0 : index
    %c0_5 = arith.constant 0 : index
    %c0_6 = arith.constant 0 : index
    %7 = vector.load %arg4[%c0_4, %c0_5, %c0_6] : memref<1x8x128xf32, #tpu.memory_space<vmem>>, vector<1x8x128xf32>
    %8 = vector.shape_cast %6 : vector<8x128xf32> to vector<1x8x128xf32>
    %cst = arith.constant dense<0.000000e+00> : vector<8x128xf32>
    %9 = vector.multi_reduction <add>, %8, %cst [0] : vector<1x8x128xf32> to vector<8x128xf32>
    %10 = vector.shape_cast %9 : vector<8x128xf32> to vector<1x8x128xf32>
    %11 = arith.addf %7, %10 : vector<1x8x128xf32>
    %c0_7 = arith.constant 0 : index
    %c0_8 = arith.constant 0 : index
    %c0_9 = arith.constant 0 : index
    %12 = vector.load %arg4[%c0_7, %c0_8, %c0_9] : memref<1x8x128xf32, #tpu.memory_space<vmem>>, vector<1x8x128xf32>
    tpu.vector_store %arg4[%c0_7, %c0_8, %c0_9], %11 {strides = array<i32>} : memref<1x8x128xf32, #tpu.memory_space<vmem>>, vector<1x8x128xf32>,
    return
  }
  func.func @transform_0(%arg0: i32, %arg1: i32) -> (i32, i32) {
    %c1_i32 = arith.constant 1 : i32
    %0 = arith.muli %arg0, %c1_i32 : i32
    %1 = arith.addi %0, %arg1 : i32
    %c0_i32 = arith.constant 0 : i32
    %c0_i32_0 = arith.constant 0 : i32
    return %1, %c0_i32 : i32, i32
  }
  func.func @transform_1(%arg0: i32, %arg1: i32) -> (i32, i32) {
    %c1_i32 = arith.constant 1 : i32
    %0 = arith.muli %arg0, %c1_i32 : i32
    %1 = arith.addi %0, %arg1 : i32
    %c0_i32 = arith.constant 0 : i32
    %c0_i32_0 = arith.constant 0 : i32
    return %1, %c0_i32 : i32, i32
  }
  func.func @transform_2(%arg0: i32, %arg1: i32) -> (i32, i32, i32) {
    %c0_i32 = arith.constant 0 : i32
    %c0_i32_0 = arith.constant 0 : i32
    %c0_i32_1 = arith.constant 0 : i32
    return %arg0, %c0_i32, %c0_i32_0 : i32, i32, i32
  }
}

</mosaic_0001>

<bundles_post_ra>
// kernel: tpu_custom_call.1
= control target key start
LH: loop header
LB: loop body
LE: loop exit
PB: predicated region body
PF: predicated region fallthrough
CT: control target
= control target key end

     0   :  { %7 = vsyncpa [#allocation3], 0  ;;  %s751_s0 = inlined_call_operand.hbm [shape: f32[16,128], index: 0, kind: input, shape index: {}]   ;;  %s752_s1 = inlined_call_operand.hbm [shape: f32[16,128], index: 1, kind: input, shape index: {}]   ;;  %s753_s2 = inlined_call_operand.hbm [shape: f32[2,8,128], index: 2, kind: output, shape index: {}]  }
   0x1   :  { %9 = vsyncpa [#allocation3 + $0x1], 0 }
   0x2   :  { %10 = vsyncpa [#allocation6], 0 }
   0x3   :  { %12 = vsyncpa [#allocation6 + $0x1], 0 }
   0x4   :  { %13 = vsyncpa [#allocation4], 0 }
   0x5   :  { %15 = vsyncpa [#allocation4 + $0x1], 0  ;;  %s590_s9 = smov 0   ;;  %s592_s10 = smov 0  }
   0x6   :  { %s594_s11 = smov 0   ;;  %s596_s12 = smov 0  }
   0x7   :  { %s598_s13 = smov 0   ;;  %s600_s14 = smov 0  }
   0x8 LB: > { %s346_s15 = sadd.s32 4294967295, %s570_s14   ;;  %s347_s16 = sadd.s32 4294967294, %s570_s14   ;;  %s570_s14 = sphi %s600_s14, %s21_s14   ;;  %s566_s13 = sphi %s598_s13, %s765_s13   ;;  %s562_s12 = sphi %s596_s12, %s764_s12   ;;  %s558_s11 = sphi %s594_s11, %s763_s11   ;;  %s554_s10 = sphi %s592_s10, %s762_s10   ;;  %s550_s9 = sphi %s590_s9, %s761_s9  }
   0x9   : > { %s33_s17 = sadd.s32 1, %s566_s13  ;;  %s42_s18 = sadd.s32 1, %s558_s11 }
   0xa   : > { %p35_p0 = scmp.ge.s32.totalorder %s33_s17, 2  ;;  %p49_p1 = scmp.ne.s32.totalorder %s558_s11, %s554_s10 }
   0xb   : > { %p50_p2 = scmp.eq.s32.totalorder %s570_s14, 0  ;;  %p55_p3 = scmp.ne.s32.totalorder %s554_s10, %s550_s9 }
   0xc   : > { %s767_s17 = smov (%p35_p0, %s33_s17), 0  ;;  %p56_p5 = scmp.eq.s32.totalorder %s346_s15, 0 }
   0xd   : > { %p631_p4 = por %p50_p2, %p49_p1  ;;  %s39_s20 = ssub.s32 %s566_s13, %s767_s17 }
   0xe   : > { %p107_p6 = scmp.eq.s32.totalorder %s346_s15, 1  ;;  %p40_p7 = scmp.eq.s32.totalorder %s39_s20, 0 }
   0xf   : > { %p637_p8 = por %p56_p5, %p55_p3  ;;  %p113_p10 = scmp.eq.s32.totalorder %s347_s16, 1 }
  0x10   : > { %p641_p9 = por %p107_p6, %p49_p1  ;;  %p379_p13 = scmp.lt.s32.totalorder %s570_s14, 2 }
  0x11   : > { %s646_s23 = scalar_select %p40_p7, %s558_s11, %s42_s18  }
  0x12   : > { %p648_p11 = por %p113_p10, %p55_p3  ;;  %s655_s25 = sand.u32 1, %s558_s11  }
  0x13   : > { %s350_s26 = sshll.u32 %s655_s25, 3  ;;  %s351_s27 = sshll.u32 %s566_s13, 7 }
  0x14   : > { %s143_s30 = scalar_lea.hbm %s751_s0, %s351_s27  ;;  %s137_s3 = scalar_lea.vmem [#allocation2], %s350_s26 }
  0x15   : > { %s145_s4 = sshll.u32 %s137_s3, 4  ;;  %p664_p0 = pnand %p379_p13, %p631_p4  ;;  %s146_s4 = int_to_ptr.vmem [resolvable:$true] %s145_s4 }
  0x16   : > { %p354_p1 = scmp.ge.s32.totalorder %s570_s14, 1  ;;  %p169_p2 = scmp.lt.s32.totalorder %s570_s14, 3 }
  0x17   : > { %s134_s6 = scalar_lea.sflag [#allocation3], %s655_s25  ;;  %p432_p3 = pneg %p664_p0 }
  0x18   : > { %s443_s7 = scalar_lea.vmem %s146_s4, 128  ;;  %s572_s8 = smov [#allocation2]  }
  0x19   : > { %p444_p5 = scmp.ne.s32.totalorder %s146_s4, %s443_s7  ;;  %s448_s15 = sshll.u32 %s572_s8, 4  ;;  %s449_s15 = int_to_ptr.vmem [resolvable:$false] %s448_s15 }
  0x1a   : > { %s450_s16 = scalar_lea.vmem %s449_s15, 256  ;;  %p451_p4 = scmp.lt.s32.totalorder %s146_s4, %s449_s15 }
  0x1b   : > { %p446_p6 = pnand %p444_p5, %p432_p3  ;;  %p452_p10 = scmp.lt.s32.totalorder %s450_s16, %s443_s7 }
  0x1d   : > { %p447_p7 = pneg %p446_p6  ;;  %p453_p13 = por %p452_p10, %p451_p4 }
  0x1f   : > { %p454_p12 = pnand %p453_p13, %p447_p7 }
  0x21   : > { %457 = shalt.err (!%p454_p12)
}
  0x22   : > { %371 = dma.hbm_to_vmem [thread:$0]  (!%p664_p0), %s143_s30, 128, %s146_s4, %s134_s6  }
  0x23   : > { %p682_p5 = pnand %p354_p1, %p169_p2  ;;  %s162_s28 = scalar_lea.hbm %s752_s1, %s351_s27 }
  0x24   : > { %s156_s29 = scalar_lea.vmem [#allocation5], %s350_s26  ;;  %s153_s7 = scalar_lea.sflag [#allocation6], %s655_s25 }
  0x25   : > { %s164_s3 = sshll.u32 %s156_s29, 4  ;;  %s573_s30 = smov [#allocation5]   ;;  %s165_s3 = int_to_ptr.vmem [resolvable:$true] %s164_s3 }
  0x26   : > { %s471_s8 = scalar_lea.vmem %s165_s3, 128  ;;  %s476_s4 = sshll.u32 %s573_s30, 4  ;;  %s477_s4 = int_to_ptr.vmem [resolvable:$false] %s476_s4 }
  0x27   : > { %p472_p12 = scmp.ne.s32.totalorder %s165_s3, %s471_s8  ;;  %s478_s6 = scalar_lea.vmem %s477_s4, 256 }
  0x28   : > { %p479_p1 = scmp.lt.s32.totalorder %s165_s3, %s477_s4  ;;  %p480_p2 = scmp.lt.s32.totalorder %s478_s6, %s471_s8 }
  0x29   : > { %p474_p6 = pnand %p472_p12, %p432_p3 }
  0x2a   : > { %p481_p4 = por %p480_p2, %p479_p1 }
  0x2b   : > { %p475_p7 = pneg %p474_p6 }
  0x2d   : > { %p482_p10 = pnand %p481_p4, %p475_p7 }
  0x2f   : > { %485 = shalt.err (!%p482_p10)
}
  0x30   : > { %374 = dma.hbm_to_vmem [thread:$0]  (!%p664_p0), %s162_s28, 128, %s165_s3, %s153_s7  }
  0x31   : > { %173 = sbr.rel (%p682_p5) target bundleno = 81 (0x51), region = 28  ;;  %s698_s25 = sand.u32 (!%p682_p5), 1, %s554_s10  }
  0x32   : > { %s355_s26 = sshll.u32 (!%p682_p5), %s698_s25, 3  ;;  %s176_s27 = scalar_lea.sflag (!%p682_p5), [#allocation3], %s698_s25 }
  0x33   : > { %s179_s15 = scalar_lea.vmem (!%p682_p5), [#allocation2], %s355_s26 }
  0x36   : > { %537 = dma.done.wait (%p637_p8), %s176_s27, 128  }
  0x37   : > { %539 = vsyncadd (%p637_p8), %s176_s27, 4294967168  ;;  %s185_s5 = scalar_lea.sflag [#allocation6], %s698_s25  ;;  %s188_s16 = scalar_lea.vmem [#allocation5], %s355_s26 }
  0x38   : > { %541 = dma.done.wait (%p637_p8), %s185_s5, 128  }
  0x39   : > { %543 = vsyncadd (%p637_p8), %s185_s5, 4294967168  ;;  %v221_v0 = vld [vmem:[%s179_s15] sm:$0xff]  ;;  %v222_v1 = vld [vmem:[%s188_s16] sm:$0xff]  ;;  %s359_s18 = sshll.u32 %s562_s12, 7  ;;  %s213_s19 = scalar_lea.vmem [#allocation7], %s355_s26 }
  0x3a   : > { %v223_v2 = vsub.f32 %v221_v0, %v222_v1  ;;  %s243_s20 = sshll.u32 %s213_s19, 4  ;;  %s241_s3 = scalar_lea.hbm %s753_s2, %s359_s18  ;;  %s244_s20 = int_to_ptr.vmem [resolvable:$true] %s243_s20 }
  0x3b   : > { %s230_s7 = scalar_lea.sflag [#allocation4], %s698_s25  ;;  %s486_s8 = scalar_lea.vmem %s244_s20, 128 }
  0x3c   : > { %v224_v3 = vmul.f32 %v223_v2, %v223_v2  ;;  %p487_p0 = scmp.ne.s32.totalorder %s244_s20, %s486_s8  ;;  %s574_s21 = smov [#allocation7]  }
  0x3d   : > { %s490_s30 = sshll.u32 %s574_s21, 4  ;;  %s491_s30 = int_to_ptr.vmem [resolvable:$false] %s490_s30 }
  0x3e   : > { %228 = vst [vmem:[%s213_s19] sm:$0xff] %v224_v3  ;;  %p488_p8 = pnand %p487_p0, %p641_p9  ;;  %s492_s4 = scalar_lea.vmem %s491_s30, 256 }
  0x3f   : > { %p493_p13 = scmp.lt.s32.totalorder %s244_s20, %s491_s30  ;;  %p494_p5 = scmp.lt.s32.totalorder %s492_s4, %s486_s8 }
  0x40   : > { %p489_p3 = pneg %p488_p8 }
  0x41   : > { %p495_p12 = por %p494_p5, %p493_p13 }
  0x43   : > { %p496_p6 = pnand %p495_p12, %p489_p3 }
  0x45   : > { %499 = shalt.err (!%p496_p6)
}
  0x46   : > { %s500_s12 = scalar_lea.hbm %s241_s3, 128  ;;  %s504_s26 = scalar_lea.hbm %s753_s2, 256 }
  0x47   : > { %p501_p7 = scmp.ne.s32.totalorder %s241_s3, %s500_s12  ;;  %p505_p4 = scmp.lt.s32.totalorder %s241_s3, %s753_s2 }
  0x48   : > { %p506_p10 = scmp.lt.s32.totalorder %s504_s26, %s500_s12 }
  0x49   : > { %p502_p1 = pnand %p501_p7, %p641_p9 }
  0x4a   : > { %p507_p0 = por %p506_p10, %p505_p4 }
  0x4b   : > { %p503_p2 = pneg %p502_p1 }
  0x4d   : > { %p508_p8 = pnand %p507_p0, %p503_p2 }
  0x4f   : > { %511 = shalt.err (!%p508_p8)
}
  0x50   : > { %366 = dma.vmem_to_hbm [thread:$0]  (%p641_p9), %s244_s20, 128, %s241_s3, %s230_s7  }
  0x51 PF: > { %s255_s5 = sand.u32 1, %s550_s9   ;;  %p760_p3 = scmp.ge.s32.totalorder %s570_s14, 2 }
  0x52   : > { %s256_s16 = scalar_lea.sflag [#allocation4], %s255_s5 }
  0x53   : > { %p376_p13 = pnand %p760_p3, %p648_p11 }
  0x55   : > { %p377_p5 = pneg %p376_p13 }
  0x57   : > { %545 = dma.done.wait (%p377_p5), %s256_s16, 128  }
  0x58   : > { %547 = vsyncadd (%p377_p5), %s256_s16, 4294967168  ;;  %s21_s14 = sadd.s32 1, %s570_s14   ;;  %s761_s9 = smov %s554_s10 }
  0x59   : > { %p18_p12 = scmp.ge.s32.totalorder %s21_s14, 4   ;;  %s762_s10 = smov %s558_s11 }
  0x5a   : > { %s763_s11 = smov %s646_s23  ;;  %s764_s12 = smov %s566_s13 }
  0x5b   : > { %s765_s13 = smov %s767_s17  ;;  %20 = sbr.rel (!%p18_p12) target bundleno = 8 (0x8), region = 90 }
  0x60   :  { %261 = vsyncpa [#allocation3], 1 }
  0x61   :  { %263 = vsyncpa [#allocation3 + $0x1], 1 }
  0x62   :  { %264 = vsyncpa [#allocation6], 1 }
  0x63   :  { %266 = vsyncpa [#allocation6 + $0x1], 1 }
  0x64   :  { %267 = vsyncpa [#allocation4], 1 }
  0x65   :  { %269 = vsyncpa [#allocation4 + $0x1], 1 }

</bundles_post_ra>
